<compile_context>
chip_gen: v6e
topology: v6e:2x2x1
jax: 0.10.0
libtpu: 0.0.40
codegen_flags: <defaults>
</compile_context>

<pallas_src>
import functools

import jax
import jax.numpy as jnp
import numpy as np
from jax.experimental import pallas as pl
from jax.experimental.pallas import tpu as pltpu


def _sigmoid_bin_fwd_kernel(pred_ref, out_ref, *, bin_count, bin_vals, reg_a,
                            min_v, max_v, use_fw_regression):
    # pred_ref: (length, TM_L) producer dtype; out_ref: (1, TM_L) f32.
    # Unrolled running first-occurrence argmax over the bin rows: pure VALU,
    # lane-dense, no XLU reductions, no gather.
    m = pred_ref[pl.ds(1, 1), :]                                # (1, TM_L)
    bias = jnp.full(m.shape, bin_vals[0], dtype=jnp.float32)    # (1, TM_L)
    for j in range(1, bin_count):
        v = pred_ref[pl.ds(1 + j, 1), :]
        gt = v > m                      # strict >: first occurrence wins ties
        m = jnp.where(gt, v, m)
        bias = jnp.where(gt, jnp.float32(bin_vals[j]), bias)

    if use_fw_regression:
        # pred_reg = (p0*reg_scale - reg_scale/2)*step = p0*reg_a + b, with b
        # already folded into bin_vals on the host.
        p0 = pred_ref[pl.ds(0, 1), :].astype(jnp.float32)
        result = p0 * jnp.float32(reg_a) + bias
    else:
        result = bias

    out_ref[...] = jnp.clip(result, jnp.float32(min_v), jnp.float32(max_v))


class SigmoidBinPallas:
    """JAX/Pallas re-implementation of SigmoidBin.forward."""

    def __init__(self, bin_count=10, min=0.0, max=1.0, reg_scale=2.0,
                 use_fw_regression=True):
        assert max > min, "SigmoidBin expects max > min (strictly increasing bins)"
        self.bin_count = bin_count
        self.length = bin_count + 1
        self.min = float(min)
        self.max = float(max)
        self.scale = float(max - min)
        self.reg_scale = float(reg_scale)
        self.step = self.scale / bin_count
        self.use_fw_regression = use_fw_regression
        self.start = self.min + self.scale / 2.0 / bin_count
        # Kept for API parity / reference checks; the kernel closes over the
        # same values as host constants instead of gathering from this table.
        self.bins = np.asarray(
            self.start + self.step * np.arange(bin_count, dtype=np.float64),
            dtype=np.float32)

        bin_vals = self.start + self.step * np.arange(bin_count, dtype=np.float64)
        if self.use_fw_regression:
            bin_vals = bin_vals - (self.reg_scale / 2.0) * self.step
        self._bin_vals = tuple(float(v) for v in bin_vals)
        self._reg_a = float(self.reg_scale * self.step)

    def get_length(self):
        return self.length

    def __call__(self, pred):
        assert pred.shape[-1] == self.length, (
            'pred.shape[-1]=%d is not equal to self.length=%d'
            % (pred.shape[-1], self.length))

        lead_shape = pred.shape[:-1]
        n = int(np.prod(lead_shape)) if lead_shape else 1

        # Lane-dense layout: (length, N).  One XLA transpose pass; producer
        # dtype (e.g. bf16) is kept through the DMA.
        pred_t = pred.reshape(n, self.length).T        # (length, n)

        # Tile sizing: big lane tiles to amortize per-step overhead, capped so
        # (a) double-buffered footprint stays well under v5e's 16 MiB scoped
        # VMEM and (b) v7x gets at least 2 grid steps for mid/large N.
        TM_L = 32768
        if n <= 256:
            tm = n                                   # single full-extent block
        else:
            half = ((pl.cdiv(n, 2) + 127) // 128) * 128
            tm = min(TM_L, half)                     # 128-lane multiple
        num_tiles = pl.cdiv(n, tm)                   # partial last block OK

        kernel = functools.partial(
            _sigmoid_bin_fwd_kernel,
            bin_count=self.bin_count,
            bin_vals=self._bin_vals,
            reg_a=self._reg_a,
            min_v=self.min,
            max_v=self.max,
            use_fw_regression=self.use_fw_regression,
        )

        out = pl.pallas_call(
            kernel,
            out_shape=jax.ShapeDtypeStruct((1, n), jnp.float32),
            grid_spec=pltpu.PrefetchScalarGridSpec(
                num_scalar_prefetch=0,
                grid=(num_tiles,),
                in_specs=[pl.BlockSpec((self.length, tm), lambda i: (0, i))],
                out_specs=pl.BlockSpec((1, tm), lambda i: (0, i)),
            ),
            compiler_params=pltpu.CompilerParams(
                dimension_semantics=("parallel",)),
        )(pred_t)

        return out.reshape(lead_shape)


def _reference_forward(pred, bins, bin_count, reg_scale, step, min_v, max_v,
                       use_fw_regression=True):
    # pure-numpy reference mirroring the PyTorch forward
    pred = np.asarray(pred, dtype=np.float32)
    pred_reg = (pred[..., 0] * reg_scale - reg_scale / 2.0) * step
    pred_bin = pred[..., 1:1 + bin_count]
    bin_idx = np.argmax(pred_bin, axis=-1)
    bin_bias = np.asarray(bins).reshape(-1)[bin_idx]
    result = pred_reg + bin_bias if use_fw_regression else bin_bias
    return np.clip(result, min_v, max_v)


if __name__ == "__main__":
    key = jax.random.PRNGKey(0)
    bin_count = 10
    module = SigmoidBinPallas(bin_count=bin_count, min=0.0, max=1.0, reg_scale=2.0)

    # small deterministic input; n = 2*200 = 400 exercises the multi-tile path
    # (2 grid steps, partial last lane block) at tiny size.
    pred = jax.random.normal(key, (2, 200, module.get_length()), dtype=jnp.float32)

    out = module(pred)
    out = jax.block_until_ready(out)

    ref = _reference_forward(np.asarray(pred), module.bins,
                             bin_count, module.reg_scale, module.step,
                             module.min, module.max)
    np.testing.assert_allclose(np.asarray(out), ref, rtol=1e-5, atol=1e-5)
    assert out.shape == pred.shape[:-1]

    print("KERNEL_OK")
</pallas_src>

<mosaic_0001>
module attributes {stable_mosaic.version = 11 : i64} {
  func.func @_sigmoid_bin_fwd_kernel(%arg0: i32, %arg1: memref<11x256xf32, #tpu.memory_space<vmem>>, %arg2: memref<1x256xf32, #tpu.memory_space<vmem>>) attributes {dimension_semantics = [#tpu.dimension_semantics<parallel>], iteration_bounds = array<i64: 2>, scalar_prefetch = 0 : i64, scratch_operands = 0 : i64, tpu.core_type = #tpu.core_type<tc>, window_params = [{transform_indices = @transform_0, window_bounds = array<i64: 11, 256>}, {transform_indices = @transform_1, window_bounds = array<i64: 1, 256>}]} {
    %c1 = arith.constant 1 : index
    %c0 = arith.constant 0 : index
    %0 = vector.load %arg1[%c1, %c0] : memref<11x256xf32, #tpu.memory_space<vmem>>, vector<1x256xf32>
    %cst = arith.constant -5.000000e-02 : f32
    %1 = vector.broadcast %cst : f32 to vector<1x256xf32>
    %c2 = arith.constant 2 : index
    %c0_0 = arith.constant 0 : index
    %2 = vector.load %arg1[%c2, %c0_0] : memref<11x256xf32, #tpu.memory_space<vmem>>, vector<1x256xf32>
    %3 = arith.cmpf ogt, %2, %0 : vector<1x256xf32>
    %4 = arith.select %3, %2, %0 : vector<1x256xi1>, vector<1x256xf32>
    %cst_1 = arith.constant 5.000000e-02 : f32
    %5 = vector.broadcast %cst_1 : f32 to vector<1x256xf32>
    %6 = arith.select %3, %5, %1 : vector<1x256xi1>, vector<1x256xf32>
    %c3 = arith.constant 3 : index
    %c0_2 = arith.constant 0 : index
    %7 = vector.load %arg1[%c3, %c0_2] : memref<11x256xf32, #tpu.memory_space<vmem>>, vector<1x256xf32>
    %8 = arith.cmpf ogt, %7, %4 : vector<1x256xf32>
    %9 = arith.select %8, %7, %4 : vector<1x256xi1>, vector<1x256xf32>
    %cst_3 = arith.constant 1.500000e-01 : f32
    %10 = vector.broadcast %cst_3 : f32 to vector<1x256xf32>
    %11 = arith.select %8, %10, %6 : vector<1x256xi1>, vector<1x256xf32>
    %c4 = arith.constant 4 : index
    %c0_4 = arith.constant 0 : index
    %12 = vector.load %arg1[%c4, %c0_4] : memref<11x256xf32, #tpu.memory_space<vmem>>, vector<1x256xf32>
    %13 = arith.cmpf ogt, %12, %9 : vector<1x256xf32>
    %14 = arith.select %13, %12, %9 : vector<1x256xi1>, vector<1x256xf32>
    %cst_5 = arith.constant 2.500000e-01 : f32
    %15 = vector.broadcast %cst_5 : f32 to vector<1x256xf32>
    %16 = arith.select %13, %15, %11 : vector<1x256xi1>, vector<1x256xf32>
    %c5 = arith.constant 5 : index
    %c0_6 = arith.constant 0 : index
    %17 = vector.load %arg1[%c5, %c0_6] : memref<11x256xf32, #tpu.memory_space<vmem>>, vector<1x256xf32>
    %18 = arith.cmpf ogt, %17, %14 : vector<1x256xf32>
    %19 = arith.select %18, %17, %14 : vector<1x256xi1>, vector<1x256xf32>
    %cst_7 = arith.constant 3.500000e-01 : f32
    %20 = vector.broadcast %cst_7 : f32 to vector<1x256xf32>
    %21 = arith.select %18, %20, %16 : vector<1x256xi1>, vector<1x256xf32>
    %c6 = arith.constant 6 : index
    %c0_8 = arith.constant 0 : index
    %22 = vector.load %arg1[%c6, %c0_8] : memref<11x256xf32, #tpu.memory_space<vmem>>, vector<1x256xf32>
    %23 = arith.cmpf ogt, %22, %19 : vector<1x256xf32>
    %24 = arith.select %23, %22, %19 : vector<1x256xi1>, vector<1x256xf32>
    %cst_9 = arith.constant 4.500000e-01 : f32
    %25 = vector.broadcast %cst_9 : f32 to vector<1x256xf32>
    %26 = arith.select %23, %25, %21 : vector<1x256xi1>, vector<1x256xf32>
    %c7 = arith.constant 7 : index
    %c0_10 = arith.constant 0 : index
    %27 = vector.load %arg1[%c7, %c0_10] : memref<11x256xf32, #tpu.memory_space<vmem>>, vector<1x256xf32>
    %28 = arith.cmpf ogt, %27, %24 : vector<1x256xf32>
    %29 = arith.select %28, %27, %24 : vector<1x256xi1>, vector<1x256xf32>
    %cst_11 = arith.constant 5.500000e-01 : f32
    %30 = vector.broadcast %cst_11 : f32 to vector<1x256xf32>
    %31 = arith.select %28, %30, %26 : vector<1x256xi1>, vector<1x256xf32>
    %c8 = arith.constant 8 : index
    %c0_12 = arith.constant 0 : index
    %32 = vector.load %arg1[%c8, %c0_12] : memref<11x256xf32, #tpu.memory_space<vmem>>, vector<1x256xf32>
    %33 = arith.cmpf ogt, %32, %29 : vector<1x256xf32>
    %34 = arith.select %33, %32, %29 : vector<1x256xi1>, vector<1x256xf32>
    %cst_13 = arith.constant 6.500000e-01 : f32
    %35 = vector.broadcast %cst_13 : f32 to vector<1x256xf32>
    %36 = arith.select %33, %35, %31 : vector<1x256xi1>, vector<1x256xf32>
    %c9 = arith.constant 9 : index
    %c0_14 = arith.constant 0 : index
    %37 = vector.load %arg1[%c9, %c0_14] : memref<11x256xf32, #tpu.memory_space<vmem>>, vector<1x256xf32>
    %38 = arith.cmpf ogt, %37, %34 : vector<1x256xf32>
    %39 = arith.select %38, %37, %34 : vector<1x256xi1>, vector<1x256xf32>
    %cst_15 = arith.constant 7.500000e-01 : f32
    %40 = vector.broadcast %cst_15 : f32 to vector<1x256xf32>
    %41 = arith.select %38, %40, %36 : vector<1x256xi1>, vector<1x256xf32>
    %c10 = arith.constant 10 : index
    %c0_16 = arith.constant 0 : index
    %42 = vector.load %arg1[%c10, %c0_16] : memref<11x256xf32, #tpu.memory_space<vmem>>, vector<1x256xf32>
    %43 = arith.cmpf ogt, %42, %39 : vector<1x256xf32>
    %cst_17 = arith.constant 8.500000e-01 : f32
    %44 = vector.broadcast %cst_17 : f32 to vector<1x256xf32>
    %45 = arith.select %43, %44, %41 : vector<1x256xi1>, vector<1x256xf32>
    %c0_18 = arith.constant 0 : index
    %c0_19 = arith.constant 0 : index
    %46 = vector.load %arg1[%c0_18, %c0_19] : memref<11x256xf32, #tpu.memory_space<vmem>>, vector<1x256xf32>
    %cst_20 = arith.constant 2.000000e-01 : f32
    %47 = vector.broadcast %cst_20 : f32 to vector<1x256xf32>
    %48 = arith.mulf %46, %47 : vector<1x256xf32>
    %49 = arith.addf %48, %45 : vector<1x256xf32>
    %cst_21 = arith.constant 0.000000e+00 : f32
    %cst_22 = arith.constant 1.000000e+00 : f32
    %50 = vector.broadcast %cst_21 : f32 to vector<1x256xf32>
    %51 = arith.maximumf %50, %49 : vector<1x256xf32>
    %52 = vector.broadcast %cst_22 : f32 to vector<1x256xf32>
    %53 = arith.minimumf %52, %51 : vector<1x256xf32>
    %c0_23 = arith.constant 0 : index
    %c0_24 = arith.constant 0 : index
    %54 = vector.load %arg2[%c0_23, %c0_24] : memref<1x256xf32, #tpu.memory_space<vmem>>, vector<1x256xf32>
    tpu.vector_store %arg2[%c0_23, %c0_24], %53 {strides = array<i32>} : memref<1x256xf32, #tpu.memory_space<vmem>>, vector<1x256xf32>,
    return
  }
  func.func @transform_0(%arg0: i32) -> (i32, i32) {
    %c0_i32 = arith.constant 0 : i32
    %c0_i32_0 = arith.constant 0 : i32
    return %c0_i32, %arg0 : i32, i32
  }
  func.func @transform_1(%arg0: i32) -> (i32, i32) {
    %c0_i32 = arith.constant 0 : i32
    %c0_i32_0 = arith.constant 0 : i32
    return %c0_i32, %arg0 : i32, i32
  }
}

</mosaic_0001>

<bundles_post_ra>
// kernel: tpu_custom_call.1
= control target key start
LH: loop header
LB: loop body
LE: loop exit
PB: predicated region body
PF: predicated region fallthrough
CT: control target
= control target key end

     0   :  { %6 = vsyncpa [#allocation3], 0  ;;  %s620_s0 = inlined_call_operand.hbm [shape: f32[11,400], index: 0, kind: input, shape index: {}]   ;;  %s621_s1 = inlined_call_operand.hbm [shape: f32[1,400], index: 1, kind: output, shape index: {}]  }
   0x1   :  { %8 = vsyncpa [#allocation3 + $0x1], 0 }
   0x2   :  { %9 = vsyncpa [#allocation4], 0 }
   0x3   :  { %11 = vsyncpa [#allocation4 + $0x1], 0  ;;  %s464_s6 = smov 0   ;;  %s466_s7 = smov 0  }
   0x4   :  { %s468_s8 = smov 0   ;;  %s470_s9 = smov 0  }
   0x5 LB: > { %s485_s10 = sadd.s32 4294967295, %s446_s9   ;;  %s278_s11 = sadd.s32 4294967294, %s446_s9   ;;  %s446_s9 = sphi %s470_s9, %s637_s9   ;;  %s442_s8 = sphi %s468_s8, %s636_s8   ;;  %s438_s7 = sphi %s466_s7, %s635_s7   ;;  %s434_s6 = sphi %s464_s6, %s634_s6  }
   0x6   : > { %s489_s12 = sadd.s32 1, %s446_s9   ;;  %s24_s13 = sadd.s32 1, %s442_s8 }
   0x7   : > { %s21_s14 = ssub.s32 %s446_s9, %s489_s12  ;;  %p31_p0 = scmp.ne.s32.totalorder %s442_s8, %s438_s7 }
   0x8   : > { %p22_p1 = scmp.eq.s32.totalorder %s21_s14, 0  ;;  %p32_p2 = scmp.eq.s32.totalorder %s446_s9, 0 }
   0x9   : > { %p37_p3 = scmp.ne.s32.totalorder %s438_s7, %s434_s6  ;;  %p38_p4 = scmp.eq.s32.totalorder %s485_s10, 0 }
   0xa   : > { %s501_s15 = scalar_select %p22_p1, %s442_s8, %s24_s13  }
   0xb   : > { %p503_p5 = por %p32_p2, %p31_p0  ;;  %p507_p6 = por %p38_p4, %p37_p3 }
   0xc   : > { %p61_p7 = scmp.eq.s32.totalorder %s485_s10, 1  ;;  %p67_p8 = scmp.eq.s32.totalorder %s278_s11, 1 }
   0xd   : > { %s625_s17 = scalar_select %p507_p6, 1, 0 }
   0xe   : > { %p316_p10 = scmp.lt.s32.totalorder %s446_s9, 2  ;;  %p514_p11 = por %p61_p7, %p31_p0 }
   0xf   : > { %p518_p12 = por %p67_p8, %p37_p3  ;;  %s87_s20 = sand.u32 1, %s442_s8  }
  0x10   : > { %s626_s18 = scalar_select %p514_p11, 1, 0 }
  0x11   : > { %s627_s19 = scalar_select %p518_p12, 1, 0 }
  0x12   : > { %s302_s21 = sshll.u32 %s446_s9, 8  ;;  %s281_s22 = sshll.u32 %s87_s20, 5 }
  0x13   : > { %s527_s25 = scalar_lea.hbm %s620_s0, %s302_s21  ;;  %s91_s26 = scalar_lea.vmem [#allocation2], %s281_s22 }
  0x14   : > { %s98_s27 = sshll.u32 %s91_s26, 4  ;;  %p531_p13 = pnand %p316_p10, %p503_p5  ;;  %s535_s27 = int_to_ptr.vmem [resolvable:$true] %s98_s27 }
  0x15   : > { %s538_s29 = scalar_lea.sflag [#allocation3], %s87_s20  ;;  %s354_s30 = scalar_lea.hbm %s527_s25, 512 }
  0x16   : > { %p355_p1 = scmp.ne.s32.totalorder %s527_s25, %s354_s30  ;;  %p356_p2 = pneg %p531_p13 }
  0x17   : > { %s359_s4 = scalar_lea.hbm %s620_s0, 1024  ;;  %p360_p5 = scmp.lt.s32.totalorder %s527_s25, %s620_s0 }
  0x18   : > { %p357_p3 = pnand %p356_p2, %p355_p1  ;;  %p361_p7 = scmp.lt.s32.totalorder %s359_s4, %s354_s30 }
  0x1a   : > { %p358_p4 = pneg %p357_p3  ;;  %p362_p8 = por %p361_p7, %p360_p5 }
  0x1c   : > { %p363_p10 = pnand %p362_p8, %p358_p4 }
  0x1e   : > { %366 = shalt.err (!%p363_p10)
}
  0x1f   : > { %s367_s13 = scalar_lea.vmem %s535_s27, 512  ;;  %s448_s14 = smov [#allocation2]  }
  0x20   : > { %p368_p9 = scmp.ne.s32.totalorder %s535_s27, %s367_s13  ;;  %s372_s16 = sshll.u32 %s448_s14, 4  ;;  %s373_s16 = int_to_ptr.vmem [resolvable:$false] %s372_s16 }
  0x21   : > { %s374_s20 = scalar_lea.vmem %s373_s16, 1024  ;;  %p375_p3 = scmp.lt.s32.totalorder %s535_s27, %s373_s16 }
  0x22   : > { %p370_p0 = pnand %p368_p9, %p356_p2  ;;  %p376_p12 = scmp.lt.s32.totalorder %s374_s20, %s367_s13 }
  0x24   : > { %p371_p1 = pneg %p370_p0  ;;  %p377_p11 = por %p376_p12, %p375_p3 }
  0x26   : > { %p378_p6 = pnand %p377_p11, %p371_p1 }
  0x28   : > { %381 = shalt.err (!%p378_p6)
}
  0x29   : > { %s449_s21 = smov 512   ;;  %s450_s22 = smov 256  }
  0x2a   : > { %s451_s23 = smov 16   ;;  %p106_p9 = scmp.lt.s32.totalorder %s446_s9, 3 }
  0x2b   : > { %311 = dma.hbm_to_vmem [thread:$0]  (!%p531_p13), %s527_s25, 512, %s535_s27, %s538_s29, %s449_s21, %s450_s22, %s451_s23  }
  0x2c   : > { %p629_p0 = scmp.ge.s32.totalorder %s446_s9, 1 }
  0x2e   : > { %p107_p2 = pnand %p629_p0, %p106_p9 }
  0x2f   : > { %s563_s24 = sand.u32 (!%p107_p2), 1, %s438_s7   ;;  %p630_p6 = scmp.ne.s32.totalorder (!%p107_p2), %s625_s17, 0 }
  0x30   : > { %110 = sbr.rel (%p107_p2) target bundleno = 93 (0x5d), region = 24  ;;  %s285_s26 = sshll.u32 (!%p107_p2), %s563_s24, 5 }
  0x31   : > { %s113_s30 = scalar_lea.sflag (!%p107_p2), [#allocation3], %s563_s24  ;;  %s567_s2 = scalar_lea.vmem (!%p107_p2), [#allocation2], %s285_s26 }
  0x35   : > { %425 = dma.done.wait (%p630_p6), %s113_s30, 512  }
  0x36   : > { %427 = vsyncadd (%p630_p6), %s113_s30, 4294966784  ;;  %v287_v0 = vld [vmem:[%s567_s2 + $0x1] ss:$8 sm:$0x3]  ;;  %v452_v4 = vmov -0.05   ;;  %v188_v30 = vlaneseq }
  0x37   : > { %v288_v1 = vld [vmem:[%s567_s2 + $0x2] ss:$8 sm:$0x3]  ;;  %v289_v2 = vld [vmem:[%s567_s2 + $0x3] ss:$8 sm:$0x3] }
  0x38   : > { %vm141_vm0 = vcmp.gt.f32.partialorder %v288_v1, %v287_v0  ;;  %v290_v6 = vld [vmem:[%s567_s2 + $0x4] ss:$8 sm:$0x3]  ;;  %v291_v9 = vld [vmem:[%s567_s2 + $0x5] ss:$8 sm:$0x3] }
  0x39   : > { %v142_v3 = vsel %vm141_vm0, %v288_v1, %v287_v0  ;;  %v143_v5 = vsel %vm141_vm0, 0.05, %v452_v4  ;;  %v292_v12 = vld [vmem:[%s567_s2 + $0x6] ss:$8 sm:$0x3]  ;;  %s286_s17 = sshll.u32 %s563_s24, 1 }
  0x3a   : > { %vm146_vm1 = vcmp.gt.f32.partialorder %v289_v2, %v142_v3  ;;  %v293_v15 = vld [vmem:[%s567_s2 + $0x7] ss:$8 sm:$0x3]  ;;  %v294_v18 = vld [vmem:[%s567_s2 + $0x10] ss:$8 sm:$0x3] }
  0x3b   : > { %v147_v7 = vsel %vm146_vm1, %v289_v2, %v142_v3  ;;  %v148_v8 = vsel %vm146_vm1, 0.15, %v143_v5  ;;  %v295_v19 = vld [vmem:[%s567_s2 + $0x11] ss:$8 sm:$0x3]  ;;  %s134_s25 = scalar_lea.vmem [#allocation5], %s286_s17 }
  0x3c   : > { %vm151_vm2 = vcmp.gt.f32.partialorder %v290_v6, %v147_v7  ;;  %v183_v22 = vld [vmem:[%s567_s2] ss:$8 sm:$0x3]  ;;  %v296_v25 = vld [vmem:[%s567_s2 + $0x12] ss:$8 sm:$0x3] }
  0x3d   : > { %v152_v10 = vsel %vm151_vm2, %v290_v6, %v147_v7  ;;  %v153_v11 = vsel %vm151_vm2, 0.25, %v148_v8  ;;  %v184_v26 = vmul.f32 0.2, %v183_v22  ;;  %s208_s27 = sshll.u32 %s134_s25, 4  ;;  %s303_s28 = sshll.u32 %s485_s10, 5  ;;  %vm190_vm9 = vcmp.lt.s32.totalorder %v188_v30, 256  ;;  %s209_s27 = int_to_ptr.vmem [resolvable:$true] %s208_s27 }
  0x3e   : > { %vm156_vm3 = vcmp.gt.f32.partialorder %v291_v9, %v152_v10  ;;  %s206_s4 = scalar_lea.hbm %s621_s1, %s303_s28  ;;  %s194_s5 = scalar_lea.sflag [#allocation4], %s563_s24 }
  0x3f   : > { %v157_v13 = vsel %vm156_vm3, %v291_v9, %v152_v10  ;;  %v158_v14 = vsel %vm156_vm3, 0.35, %v153_v11  ;;  %s382_s11 = scalar_lea.vmem %s209_s27, 32  ;;  %p631_p12 = scmp.ne.s32.totalorder %s626_s18, 0 }
  0x40   : > { %vm161_vm4 = vcmp.gt.f32.partialorder %v292_v12, %v157_v13  ;;  %p383_p11 = scmp.ne.s32.totalorder %s209_s27, %s382_s11  ;;  %s453_s13 = smov [#allocation5]  }
  0x41   : > { %v162_v16 = vsel %vm161_vm4, %v292_v12, %v157_v13  ;;  %v163_v17 = vsel %vm161_vm4, 0.45, %v158_v14  ;;  %s386_s14 = sshll.u32 %s453_s13, 4  ;;  %s387_s14 = int_to_ptr.vmem [resolvable:$false] %s386_s14 }
  0x42   : > { %vm166_vm5 = vcmp.gt.f32.partialorder %v293_v15, %v162_v16  ;;  %p384_p13 = pnand %p383_p11, %p631_p12  ;;  %s388_s16 = scalar_lea.vmem %s387_s14, 64 }
  0x43   : > { %v167_v20 = vsel %vm166_vm5, %v293_v15, %v162_v16  ;;  %v168_v21 = vsel %vm166_vm5, 0.55, %v163_v17  ;;  %p389_p5 = scmp.lt.s32.totalorder %s209_s27, %s387_s14  ;;  %p390_p7 = scmp.lt.s32.totalorder %s388_s16, %s382_s11 }
  0x44   : > { %vm171_vm6 = vcmp.gt.f32.partialorder %v294_v18, %v167_v20  ;;  %p385_p4 = pneg %p384_p13 }
  0x45   : > { %v172_v23 = vsel %vm171_vm6, %v294_v18, %v167_v20  ;;  %v173_v24 = vsel %vm171_vm6, 0.65, %v168_v21  ;;  %p391_p8 = por %p390_p7, %p389_p5 }
  0x46   : > { %vm176_vm7 = vcmp.gt.f32.partialorder %v295_v19, %v172_v23 }
  0x47   : > { %v177_v27 = vsel %vm176_vm7, %v295_v19, %v172_v23  ;;  %v178_v28 = vsel %vm176_vm7, 0.75, %v173_v24  ;;  %p392_p10 = pnand %p391_p8, %p385_p4 }
  0x48   : > { %vm181_vm8 = vcmp.gt.f32.partialorder %v296_v25, %v177_v27 }
  0x49   : > { %v182_v29 = vsel %vm181_vm8, 0.85, %v178_v28 }
  0x4a   : > { %v185_v31 = vadd.f32 %v184_v26, %v182_v29 }
  0x4c   : > { %v186_v32 = vmax.f32 %v185_v31, 0.0 }
  0x4e   : > { %v187_v33 = vmin.f32 %v186_v32, 1.0 }
  0x50   : > { %192 = vst.msk [vmem:[%s134_s25] sm:$0x3] %vm190_vm9, %v187_v33 }
  0x51   : > { %395 = shalt.err (!%p392_p10)
}
  0x52   : > { %s396_s10 = scalar_lea.hbm %s206_s4, 32  ;;  %s400_s22 = scalar_lea.hbm %s621_s1, 64 }
  0x53   : > { %p397_p1 = scmp.ne.s32.totalorder %s206_s4, %s396_s10  ;;  %p401_p0 = scmp.lt.s32.totalorder %s206_s4, %s621_s1 }
  0x54   : > { %p402_p2 = scmp.lt.s32.totalorder %s400_s22, %s396_s10 }
  0x55   : > { %p398_p3 = pnand %p397_p1, %p631_p12 }
  0x56   : > { %p403_p6 = por %p402_p2, %p401_p0 }
  0x57   : > { %p399_p9 = pneg %p398_p3 }
  0x59   : > { %p404_p11 = pnand %p403_p6, %p399_p9 }
  0x5b   : > { %407 = shalt.err (!%p404_p11)
}
  0x5c   : > { %306 = dma.vmem_to_hbm [thread:$0]  (%p631_p12), %s209_s27, 32, %s206_s4, %s194_s5  }
  0x5d PF: > { %s220_s26 = sand.u32 1, %s434_s6   ;;  %p632_p13 = scmp.ne.s32.totalorder %s627_s19, 0 }
  0x5e   : > { %p633_p4 = scmp.ge.s32.totalorder %s446_s9, 2  ;;  %s221_s30 = scalar_lea.sflag [#allocation4], %s220_s26 }
  0x60   : > { %p313_p5 = pnand %p633_p4, %p632_p13 }
  0x62   : > { %p314_p7 = pneg %p313_p5 }
  0x64   : > { %429 = dma.done.wait (%p314_p7), %s221_s30, 32  }
  0x65   : > { %431 = vsyncadd (%p314_p7), %s221_s30, 4294967264  ;;  %p14_p8 = scmp.ge.s32.totalorder %s489_s12, 4   ;;  %s634_s6 = smov %s438_s7 }
  0x66   : > { %s635_s7 = smov %s442_s8  ;;  %s636_s8 = smov %s501_s15 }
  0x67   : > { %s637_s9 = smov %s489_s12  ;;  %16 = sbr.rel (!%p14_p8) target bundleno = 5 (0x5), region = 79 }
  0x6c   :  { %226 = vsyncpa [#allocation3], 1 }
  0x6d   :  { %228 = vsyncpa [#allocation3 + $0x1], 1 }
  0x6e   :  { %229 = vsyncpa [#allocation4], 1 }
  0x6f   :  { %231 = vsyncpa [#allocation4 + $0x1], 1 }

</bundles_post_ra>
